<compile_context>
chip_gen: v6e
topology: v6e:2x2x1
jax: 0.10.0
libtpu: 0.0.40
codegen_flags: <defaults>
</compile_context>

<pallas_src>
import functools
import math

import jax
import jax.numpy as jnp
from jax import lax
from jax.experimental import pallas as pl
from jax.experimental.pallas import tpu as pltpu

_VMEM_LIMIT_BYTES = 40 * 1024 * 1024   # explicit scoped-VMEM limit (< v7x 64 MiB)
_VMEM_TILE_BUDGET = 28 * 1024 * 1024   # per-grid-step working-set budget


def _ln_kernel_mxu(x_ref, a_ref, gamma_ref, beta_ref, o_ref, *, eps):
    """Packed path: `pack` logical rows of width d folded into one 128-lane row.

    mean/var per segment via x @ A and (xc*xc) @ A where A is block-diagonal
    with 1/d entries (MXU, lane-broadcast result); affine is one full-width
    FMA; single unmasked full-width store.
    """
    x = x_ref[...].astype(jnp.float32)                        # (T, lane)
    a = a_ref[...]                                            # (lane, lane) f32
    mean = jnp.dot(x, a, preferred_element_type=jnp.float32)  # segment mean, broadcast
    xc = x - mean
    var = jnp.dot(xc * xc, a, preferred_element_type=jnp.float32)
    inv_std = lax.rsqrt(var + jnp.float32(eps))               # EUP
    y = xc * (inv_std * gamma_ref[...]) + beta_ref[...]       # full-width FMA
    o_ref[...] = y.astype(o_ref.dtype)                        # one unmasked vst


def _ln_kernel_reduce(x_ref, gamma_ref, beta_ref, o_ref, *, eps, d):
    """Plain row-wise path (lane width == D; used when D is not packable)."""
    x = x_ref[...].astype(jnp.float32)
    inv_d = jnp.float32(1.0 / d)
    mean = jnp.sum(x, axis=-1, keepdims=True) * inv_d
    xc = x - mean
    var = jnp.sum(xc * xc, axis=-1, keepdims=True) * inv_d
    inv_std = lax.rsqrt(var + jnp.float32(eps))
    y = xc * (inv_std * gamma_ref[...]) + beta_ref[...]
    o_ref[...] = y.astype(o_ref.dtype)


def _choose_tile_rows(n_rows, lane_width, itemsize, requested=None,
                      budget_bytes=_VMEM_TILE_BUDGET):
    """Row tile sized to a per-step VMEM working-set budget:
    2x double-buffered input + 2x output (native dtype) + ~3 f32 tile temps.
    Rounded to the dtype's packed-sublane multiple (8 f32 / 16 bf16 / 32 int8)."""
    itemsize = max(int(itemsize), 1)
    mult = max(8, 32 // itemsize)
    if requested is not None:
        rows = int(requested)
    else:
        per_row = lane_width * (4 * itemsize + 3 * 4)
        rows = budget_bytes // per_row
        rows = min(rows, 16384)
    rows = max(rows, mult)
    if rows >= n_rows:
        return n_rows                    # block == full dim: always a legal shape
    return (rows // mult) * mult         # ragged last block is masked by Pallas


def layer_norm_pallas(x, gamma, beta, eps=1e-4, tile_rows=None):
    """x: [..., D]; gamma/beta: [D]. Matches LN.forward: biased variance over
    the last axis, y * gamma + beta, default eps=1e-4."""
    orig_shape = x.shape
    d = orig_shape[-1]
    n_rows = math.prod(orig_shape[:-1]) if len(orig_shape) > 1 else 1

    # Lane packing for small D: fold `pack` consecutive rows into one 128-lane
    # row so DMAs and the output store are lane-dense.  If n_rows is not a
    # multiple of `pack`, pad a few (< pack) dummy rows instead of dropping
    # the lane-dense layout.
    pack = 128 // d if (0 < d < 128 and 128 % d == 0) else 1
    # TODO(synk): small D with 128 % D != 0 still runs lane-sparse (pack == 1).
    lane = pack * d

    x_flat = x.reshape(n_rows, d)
    pad_rows = (-n_rows) % pack
    if pad_rows:
        x_flat = jnp.pad(x_flat, ((0, pad_rows), (0, 0)))
    rp = (n_rows + pad_rows) // pack
    x2 = x_flat.reshape(rp, lane)          # contiguous reshape: no extra HBM pass

    gamma_f = jnp.asarray(gamma, jnp.float32).reshape(d)
    beta_f = jnp.asarray(beta, jnp.float32).reshape(d)
    gamma2 = jnp.tile(gamma_f, pack).reshape(1, lane)   # lane-aligned affine
    beta2 = jnp.tile(beta_f, pack).reshape(1, lane)

    tr = _choose_tile_rows(rp, lane, x.dtype.itemsize, tile_rows)
    grid = (pl.cdiv(rp, tr),)

    x_spec = pl.BlockSpec((tr, lane), lambda i: (i, 0))
    o_spec = pl.BlockSpec((tr, lane), lambda i: (i, 0))
    vec_spec = pl.BlockSpec((1, lane), lambda i: (0, 0))

    if pack > 1:
        # Block-diagonal averaging matrix: A[i, j] = 1/d iff i, j in same segment.
        seg = jnp.arange(lane, dtype=jnp.int32) // d
        a_mat = (seg[:, None] == seg[None, :]).astype(jnp.float32) * jnp.float32(1.0 / d)
        kernel = functools.partial(_ln_kernel_mxu, eps=float(eps))
        in_specs = [x_spec,
                    pl.BlockSpec((lane, lane), lambda i: (0, 0)),
                    vec_spec, vec_spec]
        args = (x2, a_mat, gamma2, beta2)
    else:
        kernel = functools.partial(_ln_kernel_reduce, eps=float(eps), d=d)
        in_specs = [x_spec, vec_spec, vec_spec]
        args = (x2, gamma2, beta2)

    out = pl.pallas_call(
        kernel,
        out_shape=jax.ShapeDtypeStruct((rp, lane), x.dtype),
        grid_spec=pltpu.PrefetchScalarGridSpec(
            num_scalar_prefetch=0,
            grid=grid,
            in_specs=in_specs,
            out_specs=o_spec,
        ),
        compiler_params=pltpu.CompilerParams(
            dimension_semantics=("parallel",),   # rows shard across TCs on v7x
            vmem_limit_bytes=_VMEM_LIMIT_BYTES,
        ),
    )(*args)

    out = out.reshape(rp * pack, d)
    if pad_rows:
        out = out[:n_rows]
    return out.reshape(orig_shape)


def layer_norm_ref(x, gamma, beta, eps=1e-4):
    xf = x.astype(jnp.float32)
    mean = jnp.mean(xf, axis=-1, keepdims=True)
    var = jnp.mean((xf - mean) ** 2, axis=-1, keepdims=True)
    y = (xf - mean) / jnp.sqrt(var + eps)
    return (y * gamma.astype(jnp.float32) + beta.astype(jnp.float32)).astype(x.dtype)


if __name__ == "__main__":
    mod_dim = 32
    eps = 1e-4

    # Module parameters exactly as in LN.__init__: beta = ones, gamma = zeros.
    beta = jnp.ones((mod_dim,), jnp.float32)
    gamma = jnp.zeros((mod_dim,), jnp.float32)

    key = jax.random.PRNGKey(0)
    x = jax.random.normal(key, (2, 8, mod_dim), jnp.float32)  # batch=2, seq=8, hidden=32

    out = jax.block_until_ready(layer_norm_pallas(x, gamma, beta, eps=eps))
    ref = layer_norm_ref(x, gamma, beta, eps=eps)
    assert out.shape == x.shape and out.dtype == x.dtype
    assert jnp.allclose(out, ref, atol=1e-5, rtol=1e-5), "mismatch (module params)"

    # Non-trivial gamma/beta (gamma=0 above is insensitive to the
    # normalization itself), row count not a multiple of pack (exercises the
    # pack-remainder padding) and tile_rows=8 (ragged masked last block).
    k1, k2, k3, k4 = jax.random.split(key, 4)
    g2 = jax.random.normal(k1, (mod_dim,), jnp.float32)
    b2 = jax.random.normal(k2, (mod_dim,), jnp.float32)
    x2 = jax.random.normal(k3, (3, 37, mod_dim), jnp.float32)   # 111 rows, pack=4
    out2 = jax.block_until_ready(layer_norm_pallas(x2, g2, b2, eps=eps, tile_rows=8))
    ref2 = layer_norm_ref(x2, g2, b2, eps=eps)
    assert jnp.allclose(out2, ref2, atol=1e-4, rtol=1e-4), "mismatch (packed/padded/ragged)"

    # Lane-dense D >= 128 exercises the non-packed (reduce) path.
    d3 = 256
    g3 = jax.random.normal(k4, (d3,), jnp.float32)
    b3 = 0.5 * jnp.ones((d3,), jnp.float32)
    x3 = jax.random.normal(k2, (3, 5, d3), jnp.float32)
    out3 = jax.block_until_ready(layer_norm_pallas(x3, g3, b3, eps=eps))
    ref3 = layer_norm_ref(x3, g3, b3, eps=eps)
    assert jnp.allclose(out3, ref3, atol=1e-5, rtol=1e-5), "mismatch (D=256)"

    print("KERNEL_OK")
</pallas_src>

<mosaic_0001>
module attributes {stable_mosaic.version = 11 : i64} {
  func.func @_ln_kernel_mxu(%arg0: i32, %arg1: memref<4x128xf32, #tpu.memory_space<vmem>>, %arg2: memref<128x128xf32, #tpu.memory_space<vmem>>, %arg3: memref<1x128xf32, #tpu.memory_space<vmem>>, %arg4: memref<1x128xf32, #tpu.memory_space<vmem>>, %arg5: memref<4x128xf32, #tpu.memory_space<vmem>>) attributes {dimension_semantics = [#tpu.dimension_semantics<parallel>], iteration_bounds = array<i64: 1>, scalar_prefetch = 0 : i64, scratch_operands = 0 : i64, tpu.core_type = #tpu.core_type<tc>, window_params = [{transform_indices = @transform_0, window_bounds = array<i64: 4, 128>}, {pipeline_mode = #tpu.pipeline_mode<synchronous>, transform_indices = @transform_1, window_bounds = array<i64: 128, 128>}, {pipeline_mode = #tpu.pipeline_mode<synchronous>, transform_indices = @transform_2, window_bounds = array<i64: 1, 128>}, {pipeline_mode = #tpu.pipeline_mode<synchronous>, transform_indices = @transform_3, window_bounds = array<i64: 1, 128>}, {transform_indices = @transform_4, window_bounds = array<i64: 4, 128>}]} {
    %c0 = arith.constant 0 : index
    %c0_0 = arith.constant 0 : index
    %0 = vector.load %arg1[%c0, %c0_0] : memref<4x128xf32, #tpu.memory_space<vmem>>, vector<4x128xf32>
    %c0_1 = arith.constant 0 : index
    %c0_2 = arith.constant 0 : index
    %1 = vector.load %arg2[%c0_1, %c0_2] : memref<128x128xf32, #tpu.memory_space<vmem>>, vector<128x128xf32>
    %cst = arith.constant dense<0.000000e+00> : vector<4x128xf32>
    %2 = tpu.matmul %0, %1, %cst {dimension_numbers = #tpu.dot_dimension_numbers<[1], [0], [0], [1], [0, 0, 1, 1], [], []>} : vector<4x128xf32>, vector<128x128xf32>, vector<4x128xf32> -> vector<4x128xf32>
    %3 = arith.subf %0, %2 : vector<4x128xf32>
    %4 = arith.mulf %3, %3 : vector<4x128xf32>
    %cst_3 = arith.constant dense<0.000000e+00> : vector<4x128xf32>
    %5 = tpu.matmul %4, %1, %cst_3 {dimension_numbers = #tpu.dot_dimension_numbers<[1], [0], [0], [1], [0, 0, 1, 1], [], []>} : vector<4x128xf32>, vector<128x128xf32>, vector<4x128xf32> -> vector<4x128xf32>
    %cst_4 = arith.constant 9.99999974E-5 : f32
    %6 = vector.broadcast %cst_4 : f32 to vector<4x128xf32>
    %7 = arith.addf %5, %6 : vector<4x128xf32>
    %8 = math.rsqrt %7 : vector<4x128xf32>
    %c0_5 = arith.constant 0 : index
    %c0_6 = arith.constant 0 : index
    %9 = vector.load %arg3[%c0_5, %c0_6] : memref<1x128xf32, #tpu.memory_space<vmem>>, vector<1x128xf32>
    %10 = vector.broadcast %9 : vector<1x128xf32> to vector<4x128xf32>
    %11 = arith.mulf %8, %10 : vector<4x128xf32>
    %12 = arith.mulf %3, %11 : vector<4x128xf32>
    %c0_7 = arith.constant 0 : index
    %c0_8 = arith.constant 0 : index
    %13 = vector.load %arg4[%c0_7, %c0_8] : memref<1x128xf32, #tpu.memory_space<vmem>>, vector<1x128xf32>
    %14 = vector.broadcast %13 : vector<1x128xf32> to vector<4x128xf32>
    %15 = arith.addf %12, %14 : vector<4x128xf32>
    %c0_9 = arith.constant 0 : index
    %c0_10 = arith.constant 0 : index
    %16 = vector.load %arg5[%c0_9, %c0_10] : memref<4x128xf32, #tpu.memory_space<vmem>>, vector<4x128xf32>
    tpu.vector_store %arg5[%c0_9, %c0_10], %15 {strides = array<i32>} : memref<4x128xf32, #tpu.memory_space<vmem>>, vector<4x128xf32>,
    return
  }
  func.func @transform_0(%arg0: i32) -> (i32, i32) {
    %c0_i32 = arith.constant 0 : i32
    %c0_i32_0 = arith.constant 0 : i32
    return %arg0, %c0_i32 : i32, i32
  }
  func.func @transform_1(%arg0: i32) -> (i32, i32) {
    %c0_i32 = arith.constant 0 : i32
    %c0_i32_0 = arith.constant 0 : i32
    %c0_i32_1 = arith.constant 0 : i32
    return %c0_i32, %c0_i32_0 : i32, i32
  }
  func.func @transform_2(%arg0: i32) -> (i32, i32) {
    %c0_i32 = arith.constant 0 : i32
    %c0_i32_0 = arith.constant 0 : i32
    %c0_i32_1 = arith.constant 0 : i32
    return %c0_i32, %c0_i32_0 : i32, i32
  }
  func.func @transform_3(%arg0: i32) -> (i32, i32) {
    %c0_i32 = arith.constant 0 : i32
    %c0_i32_0 = arith.constant 0 : i32
    %c0_i32_1 = arith.constant 0 : i32
    return %c0_i32, %c0_i32_0 : i32, i32
  }
  func.func @transform_4(%arg0: i32) -> (i32, i32) {
    %c0_i32 = arith.constant 0 : i32
    %c0_i32_0 = arith.constant 0 : i32
    return %arg0, %c0_i32 : i32, i32
  }
}

</mosaic_0001>

<bundles_post_ra>
// kernel: tpu_custom_call.1
= control target key start
LH: loop header
LB: loop body
LE: loop exit
PB: predicated region body
PF: predicated region fallthrough
CT: control target
= control target key end

     0   :  { %9 = vsyncpa [#allocation3], 0  ;;  %s500_s0 = inlined_call_operand.hbm [shape: f32[4,128], index: 0, kind: input, shape index: {}]   ;;  %s501_s1 = inlined_call_operand.hbm [shape: f32[128,128], index: 1, kind: input, shape index: {}]   ;;  %s502_s2 = inlined_call_operand.vmem [shape: f32[1,128], index: 2, kind: input, shape index: {}]   ;;  %s503_s3 = inlined_call_operand.vmem [shape: f32[1,128], index: 3, kind: input, shape index: {}]   ;;  %s504_s4 = inlined_call_operand.hbm [shape: f32[4,128], index: 4, kind: output, shape index: {}]  }
   0x1   :  { %10 = vsyncpa [#allocation6], 0 }
   0x2   :  { %11 = vsyncpa [#allocation4], 0  ;;  %s419_s15 = smov [#allocation2]   ;;  %s420_s17 = smov [#allocation5]  }
   0x3   :  { %s18_s16 = sshll.u32 %s419_s15, 4  ;;  %s27_s18 = sshll.u32 %s420_s17, 4  ;;  %s19_s16 = int_to_ptr.vmem [resolvable:$true] %s18_s16  ;;  %s28_s18 = int_to_ptr.vmem [resolvable:$true] %s27_s18 }
   0x4   :  { %s361_s19 = scalar_lea.vmem %s19_s16, 64  ;;  %p366_p1 = scmp.lt.s32.totalorder %s19_s16, %s19_s16 }
   0x5   :  { %p362_p0 = scmp.ne.s32.totalorder %s19_s16, %s361_s19  ;;  %p367_p2 = scmp.lt.s32.totalorder %s361_s19, %s361_s19 }
   0x7   :  { %p368_p3 = por %p367_p2, %p366_p1 }
   0x9   :  { %p369_p4 = pnand %p368_p3, %p362_p0 }
   0xb   :  { %372 = shalt.err (!%p369_p4)
}
   0xc   :  { %21 = dma.hbm_to_vmem [thread:$0]  %s500_s0, 64, %s19_s16, [#allocation3]  }
   0xd   :  { %s381_s22 = scalar_lea.vmem %s28_s18, 2048  ;;  %p386_p6 = scmp.lt.s32.totalorder %s28_s18, %s28_s18 }
   0xe   :  { %p382_p5 = scmp.ne.s32.totalorder %s28_s18, %s381_s22  ;;  %p387_p7 = scmp.lt.s32.totalorder %s381_s22, %s381_s22 }
  0x10   :  { %p388_p8 = por %p387_p7, %p386_p6 }
  0x12   :  { %p389_p9 = pnand %p388_p8, %p382_p5 }
  0x14   :  { %392 = shalt.err (!%p389_p9)
}
  0x15   :  { %s421_s23 = smov 128   ;;  %s422_s24 = smov 8  }
  0x16   :  { %33 = dma.hbm_to_vmem [thread:$0]  %s501_s1, 2048, %s28_s18, [#allocation6], %s421_s23, %s421_s23, %s422_s24  }
  0x17   :  { %413 = dma.done.wait [#allocation3], 64  }
  0x18   :  { %414 = vsyncadd [#allocation3], 4294967232 }
  0x19   :  { %415 = dma.done.wait [#allocation6], 2048  }
  0x1a   :  { %416 = vsyncadd [#allocation6], 4294965248  ;;  %v423_v0 = vmov 0.0   ;;  %vm424_vm0 = vmmov 0   ;;  %v60_v1 = vld [vmem:[#allocation5 + $0x78] sm:$0xff]  ;;  %v59_v2 = vld [vmem:[#allocation5 + $0x70] sm:$0xff] }
  0x1b   :  { %274 = vmatprep.subr.mxu0 %v423_v0  ;;  %306 = vmatprep.mubr.msk.f32.mxu0 %vm424_vm0, %v423_v0  ;;  %v58_v3 = vld [vmem:[#allocation5 + $0x68] sm:$0xff]  ;;  %v57_v4 = vld [vmem:[#allocation5 + $0x60] sm:$0xff]  ;;  %v56_v5 = vld [vmem:[#allocation5 + $0x58] sm:$0xff]  ;;  %s425_s29 = smov [#allocation7]  }
  0x1c   :  { %309 = vmatprep.subr.mxu1 %v423_v0  ;;  %341 = vmatprep.mubr.msk.f32.mxu1 %vm424_vm0, %v423_v0  ;;  %v55_v6 = vld [vmem:[#allocation5 + $0x50] sm:$0xff]  ;;  %v54_v7 = vld [vmem:[#allocation5 + $0x48] sm:$0xff]  ;;  %v53_v8 = vld [vmem:[#allocation5 + $0x40] sm:$0xff]  ;;  %s228_s30 = sshll.u32 %s425_s29, 4  ;;  %s229_s30 = int_to_ptr.vmem [resolvable:$true] %s228_s30 }
  0x1d   :  { %275 = vmatpush3.msra.mxu0 %v60_v1  ;;  %310 = vmatpush3.msra.mxu1 %v60_v1  ;;  %v52_v9 = vld [vmem:[#allocation5 + $0x38] sm:$0xff]  ;;  %v51_v10 = vld [vmem:[#allocation5 + $0x30] sm:$0xff]  ;;  %v50_v11 = vld [vmem:[#allocation5 + $0x28] sm:$0xff]  ;;  %s393_s5 = scalar_lea.vmem %s229_s30, 64  ;;  %p398_p11 = scmp.lt.s32.totalorder %s229_s30, %s229_s30 }
  0x1e   :  { %276 = vmatprep.subr.mxu0 %v423_v0  ;;  %311 = vmatprep.subr.mxu1 %v423_v0  ;;  %v49_v12 = vld [vmem:[#allocation5 + $0x20] sm:$0xff]  ;;  %v48_v13 = vld [vmem:[#allocation5 + $0x18] sm:$0xff]  ;;  %v47_v14 = vld [vmem:[#allocation5 + $0x10] sm:$0xff]  ;;  %p394_p10 = scmp.ne.s32.totalorder %s229_s30, %s393_s5  ;;  %p399_p12 = scmp.lt.s32.totalorder %s393_s5, %s393_s5 }
  0x1f   :  { %277 = vmatpush3.msra.mxu0 %v59_v2  ;;  %312 = vmatpush3.msra.mxu1 %v59_v2  ;;  %v46_v15 = vld [vmem:[#allocation5 + $0x8] sm:$0xff]  ;;  %v45_v16 = vld [vmem:[#allocation5] sm:$0xff]  ;;  %v44_v17 = vld [vmem:[#allocation2] sm:$0xf] }
  0x20   :  { %278 = vmatprep.subr.mxu0 %v423_v0  ;;  %313 = vmatprep.subr.mxu1 %v423_v0  ;;  %v238_v25 = vld [vmem:[%s502_s2] ss:$0 sm:$0xff]  ;;  %p400_p13 = por %p399_p12, %p398_p11 }
  0x21   :  { %279 = vmatpush3.msra.mxu0 %v58_v3  ;;  %314 = vmatpush3.msra.mxu1 %v58_v3  ;;  %v239_v28 = vld [vmem:[%s503_s3] ss:$0 sm:$0xff] }
  0x22   :  { %280 = vmatprep.subr.mxu0 %v423_v0  ;;  %315 = vmatprep.subr.mxu1 %v423_v0  ;;  %p401_p0 = pnand %p400_p13, %p394_p10 }
  0x23   :  { %281 = vmatpush3.msra.mxu0 %v57_v4  ;;  %316 = vmatpush3.msra.mxu1 %v57_v4 }
  0x24   :  { %282 = vmatprep.subr.mxu0 %v423_v0  ;;  %317 = vmatprep.subr.mxu1 %v423_v0 }
  0x25   :  { %283 = vmatpush3.msra.mxu0 %v56_v5  ;;  %318 = vmatpush3.msra.mxu1 %v56_v5 }
  0x26   :  { %284 = vmatprep.subr.mxu0 %v423_v0  ;;  %319 = vmatprep.subr.mxu1 %v423_v0 }
  0x27   :  { %285 = vmatpush3.msra.mxu0 %v55_v6  ;;  %320 = vmatpush3.msra.mxu1 %v55_v6 }
  0x28   :  { %286 = vmatprep.subr.mxu0 %v423_v0  ;;  %321 = vmatprep.subr.mxu1 %v423_v0 }
  0x29   :  { %287 = vmatpush3.msra.mxu0 %v54_v7  ;;  %322 = vmatpush3.msra.mxu1 %v54_v7 }
  0x2a   :  { %288 = vmatprep.subr.mxu0 %v423_v0  ;;  %323 = vmatprep.subr.mxu1 %v423_v0 }
  0x2b   :  { %289 = vmatpush3.msra.mxu0 %v53_v8  ;;  %324 = vmatpush3.msra.mxu1 %v53_v8 }
  0x2c   :  { %290 = vmatprep.subr.mxu0 %v423_v0  ;;  %325 = vmatprep.subr.mxu1 %v423_v0 }
  0x2d   :  { %291 = vmatpush3.msra.mxu0 %v52_v9  ;;  %326 = vmatpush3.msra.mxu1 %v52_v9 }
  0x2e   :  { %292 = vmatprep.subr.mxu0 %v423_v0  ;;  %327 = vmatprep.subr.mxu1 %v423_v0 }
  0x2f   :  { %293 = vmatpush3.msra.mxu0 %v51_v10  ;;  %328 = vmatpush3.msra.mxu1 %v51_v10 }
  0x30   :  { %294 = vmatprep.subr.mxu0 %v423_v0  ;;  %329 = vmatprep.subr.mxu1 %v423_v0 }
  0x31   :  { %295 = vmatpush3.msra.mxu0 %v50_v11  ;;  %330 = vmatpush3.msra.mxu1 %v50_v11 }
  0x32   :  { %296 = vmatprep.subr.mxu0 %v423_v0  ;;  %331 = vmatprep.subr.mxu1 %v423_v0 }
  0x33   :  { %297 = vmatpush3.msra.mxu0 %v49_v12  ;;  %332 = vmatpush3.msra.mxu1 %v49_v12 }
  0x34   :  { %298 = vmatprep.subr.mxu0 %v423_v0  ;;  %333 = vmatprep.subr.mxu1 %v423_v0 }
  0x35   :  { %299 = vmatpush3.msra.mxu0 %v48_v13  ;;  %334 = vmatpush3.msra.mxu1 %v48_v13 }
  0x36   :  { %300 = vmatprep.subr.mxu0 %v423_v0  ;;  %335 = vmatprep.subr.mxu1 %v423_v0 }
  0x37   :  { %301 = vmatpush3.msra.mxu0 %v47_v14  ;;  %336 = vmatpush3.msra.mxu1 %v47_v14 }
  0x38   :  { %302 = vmatprep.subr.mxu0 %v423_v0  ;;  %337 = vmatprep.subr.mxu1 %v423_v0 }
  0x39   :  { %303 = vmatpush3.msra.mxu0 %v46_v15  ;;  %338 = vmatpush3.msra.mxu1 %v46_v15 }
  0x3a   :  { %304 = vmatprep.subr.mxu0 %v423_v0  ;;  %339 = vmatprep.subr.mxu1 %v423_v0 }
  0x3b   :  { %305 = vmatpush3.msra.mxu0 %v45_v16  ;;  %340 = vmatpush3.msra.mxu1 %v45_v16 }
  0x3c   :  { %307 = vmatmul.mubr.f32.vlgmr.msra.gmra.mxu0 %v44_v17 }
  0xfc   :  { %v127_v18 = vpop.f32.mrf.mxu0 }
  0xfd   :  { %v131_v19 = vsub.f32 %v44_v17, %v127_v18 }
  0xfe   :  { %v308_v20 = vpop.f32.mrf.mxu0 }
  0xff   :  { %v132_v21 = vmul.f32 %v131_v19, %v131_v19 }
 0x101   :  { %342 = vmatmul.mubr.f32.vlgmr.msra.gmra.mxu1 %v132_v21 }
 0x1c1   :  { %v199_v22 = vpop.f32.mrf.mxu1 }
 0x1c2   :  { %v200_v23 = vadd.f32 0.0001, %v199_v22 }
 0x1c3   :  { %v343_v24 = vpop.f32.mrf.mxu1 }
 0x1c4   :  { %351 = vrsqrt.f32 %v200_v23 }
 0x1d1   :  { %v352_v26 = vpop.eup %351 }
 0x1d2   :  { %v211_v27 = vmul.f32 %v352_v26, %v238_v25 }
 0x1d4   :  { %v212_v29 = vmul.f32 %v211_v27, %v131_v19 }
 0x1d6   :  { %v220_v30 = vadd.f32 %v239_v28, %v212_v29 }
 0x1d8   :  { %221 = vst [vmem:[#allocation7] sm:$0xf] %v220_v30 }
 0x1d9   :  { %404 = shalt.err (!%p401_p0)
}
 0x1da   :  { %231 = dma.vmem_to_hbm [thread:$0]  %s229_s30, 64, %s504_s4, [#allocation4]  }
 0x1db   :  { %417 = dma.done.wait [#allocation4], 64  }
 0x1dc   :  { %418 = vsyncadd [#allocation4], 4294967232 }
 0x1dd   :  { %235 = vsyncpa [#allocation3], 1 }
 0x1de   :  { %236 = vsyncpa [#allocation6], 1 }
 0x1df   :  { %237 = vsyncpa [#allocation4], 1 }

</bundles_post_ra>
